<compile_context>
chip_gen: v6e
topology: v6e:2x2x1
jax: 0.10.0
libtpu: 0.0.40
codegen_flags: <defaults>
</compile_context>

<pallas_src>
import functools

import jax
import jax.numpy as jnp
from jax import lax
from jax.experimental import pallas as pl
from jax.experimental.pallas import tpu as pltpu

_LANE = 128


def _flatten_pad(x):
    """NCHW -> (a*b, cd_padded) with zero padding on the lane axis."""
    a, b, c, d = x.shape
    ab, cd = a * b, c * d
    feats = x.reshape(ab, cd)
    cd_p = ((cd + _LANE - 1) // _LANE) * _LANE
    if cd_p != cd:
        feats = jnp.pad(feats, ((0, 0), (0, cd_p - cd)))
    return feats, ab, cd_p


def _choose_tk(cd_p):
    """Largest lane-aligned contraction tile that divides the padded width."""
    for cand in (1024, 512, 256, 128):
        if cd_p % cand == 0:
            return cand
    return cd_p  # unreachable: cd_p is always a multiple of 128


# ---------------------------------------------------------------------------
# Kernels
# ---------------------------------------------------------------------------
def _gram_kernel(f_ref, g_ref, *, inv_norm):
    """G = (F @ F^T) * inv_norm, contraction axis tiled over the grid."""
    k = pl.program_id(0)

    @pl.when(k == 0)
    def _init():
        g_ref[...] = jnp.zeros_like(g_ref)

    f = f_ref[...]  # native dtype; MXU accumulates in f32
    g_ref[...] += lax.dot_general(
        f, f,
        dimension_numbers=(((1,), (1,)), ((), ())),
        preferred_element_type=jnp.float32)

    @pl.when(k == pl.num_programs(0) - 1)
    def _finalize():
        g_ref[...] = g_ref[...] * inv_norm


def _style_loss_kernel(f_ref, t_ref, loss_ref, acc_ref, *, inv_norm, inv_count):
    """loss = mean((F@F^T * inv_norm - target)^2); only the scalar leaves chip."""
    k = pl.program_id(0)

    @pl.when(k == 0)
    def _init():
        acc_ref[...] = jnp.zeros_like(acc_ref)
        loss_ref[0, 0] = 0.0

    f = f_ref[...]
    acc_ref[...] += lax.dot_general(
        f, f,
        dimension_numbers=(((1,), (1,)), ((), ())),
        preferred_element_type=jnp.float32)

    @pl.when(k == pl.num_programs(0) - 1)
    def _finalize():
        diff = acc_ref[...] * inv_norm - t_ref[...]
        loss_ref[0, 0] = jnp.sum(diff * diff) * inv_count


# ---------------------------------------------------------------------------
# Wrappers
# ---------------------------------------------------------------------------
def gram_matrix(x):
    """Pallas equivalent of the PyTorch gram_matrix helper.  x is NCHW."""
    a, b, c, d = x.shape
    feats, ab, cd_p = _flatten_pad(x)
    tk = _choose_tk(cd_p)
    n_k = cd_p // tk
    kernel = functools.partial(_gram_kernel, inv_norm=1.0 / float(a * b * c * d))
    return pl.pallas_call(
        kernel,
        out_shape=jax.ShapeDtypeStruct((ab, ab), jnp.float32),
        grid=(n_k,),
        in_specs=[pl.BlockSpec((ab, tk), lambda k: (0, k))],
        out_specs=pl.BlockSpec((ab, ab), lambda k: (0, 0)),  # resident accumulator
        compiler_params=pltpu.CompilerParams(
            dimension_semantics=("arbitrary",)),
    )(feats)


class StyleLoss:
    """JAX/Pallas port of the PyTorch StyleLoss module."""

    def __init__(self, target_feature):
        # target_feature: (a, b, c, d) NCHW; Gram is "detached" by construction.
        self.target = gram_matrix(target_feature)  # (ab, ab) f32
        self.loss = None

    def getGramMatrix(self):
        return self.target

    def forward(self, x):
        a, b, c, d = x.shape
        feats, ab, cd_p = _flatten_pad(x)
        if ab != self.target.shape[0]:
            raise ValueError(
                f"StyleLoss: input has {ab} feature rows but target Gram is "
                f"{self.target.shape}; shapes must match.")

        tk = _choose_tk(cd_p)
        n_k = cd_p // tk
        kernel = functools.partial(
            _style_loss_kernel,
            inv_norm=1.0 / float(a * b * c * d),
            inv_count=1.0 / float(ab * ab),
        )
        loss = pl.pallas_call(
            kernel,
            out_shape=jax.ShapeDtypeStruct((1, 1), jnp.float32),
            grid=(n_k,),
            in_specs=[
                pl.BlockSpec((ab, tk), lambda k: (0, k)),   # F slab (pipelined)
                pl.BlockSpec((ab, ab), lambda k: (0, 0)),   # target (resident)
            ],
            out_specs=pl.BlockSpec(memory_space=pltpu.MemorySpace.SMEM),
            scratch_shapes=[pltpu.VMEM((ab, ab), jnp.float32)],  # Gram accumulator
            compiler_params=pltpu.CompilerParams(
                dimension_semantics=("arbitrary",)),
        )(feats, self.target)

        self.loss = loss[0, 0]
        # TODO(synk): no autograd graph is built; loss is a plain value (PyTorch
        # backward-through-StyleLoss has no direct equivalent here).
        # Same as the PyTorch module: forward is a pass-through on the input.
        return x

    __call__ = forward


# ---------------------------------------------------------------------------
# Driver
# ---------------------------------------------------------------------------
if __name__ == "__main__":
    key = jax.random.PRNGKey(0)
    k1, k2, k3, k4 = jax.random.split(key, 4)

    def ref_loss_fn(x, t):
        a, b, c, d = x.shape
        fx = x.reshape(a * b, c * d).astype(jnp.float32)
        ft = t.reshape(a * b, c * d).astype(jnp.float32)
        gx = jnp.matmul(fx, fx.T, precision=lax.Precision.HIGHEST) / (a * b * c * d)
        gt = jnp.matmul(ft, ft.T, precision=lax.Precision.HIGHEST) / (a * b * c * d)
        return jnp.mean((gx - gt) ** 2)

    # Test 1: small aligned NCHW (batch=2, channels=4, 16x16 spatial).
    tgt1 = jax.random.normal(k1, (2, 4, 16, 16), dtype=jnp.float32)
    x1 = jax.random.normal(k2, (2, 4, 16, 16), dtype=jnp.float32)
    mod1 = StyleLoss(tgt1)
    out1 = mod1(x1)
    jax.block_until_ready(out1)
    jax.block_until_ready(mod1.loss)
    assert jnp.allclose(out1, x1), "forward must return the input unchanged"
    assert jnp.allclose(mod1.loss, ref_loss_fn(x1, tgt1), rtol=1e-4, atol=1e-6), (
        mod1.loss, ref_loss_fn(x1, tgt1))

    # Test 2: non-128-multiple spatial size -> exercises lane padding and the
    # multi-step contraction accumulation (cd=300 -> padded 384, 3 k-steps).
    tgt2 = jax.random.normal(k3, (1, 8, 15, 20), dtype=jnp.float32)
    x2 = jax.random.normal(k4, (1, 8, 15, 20), dtype=jnp.float32)
    mod2 = StyleLoss(tgt2)
    out2 = mod2(x2)
    jax.block_until_ready(out2)
    jax.block_until_ready(mod2.loss)
    assert jnp.allclose(out2, x2), "forward must return the input unchanged"
    assert jnp.allclose(mod2.loss, ref_loss_fn(x2, tgt2), rtol=1e-4, atol=1e-6), (
        mod2.loss, ref_loss_fn(x2, tgt2))

    print("KERNEL_OK")
</pallas_src>

<mosaic_0001>
module attributes {stable_mosaic.version = 11 : i64} {
  func.func @_gram_kernel(%arg0: i32, %arg1: memref<8x256xf32, #tpu.memory_space<vmem>>, %arg2: memref<8x8xf32, #tpu.memory_space<vmem>>) attributes {dimension_semantics = [#tpu.dimension_semantics<arbitrary>], iteration_bounds = array<i64: 1>, scalar_prefetch = 0 : i64, scratch_operands = 0 : i64, tpu.core_type = #tpu.core_type<tc>, window_params = [{transform_indices = @transform_0, window_bounds = array<i64: 8, 256>}, {pipeline_mode = #tpu.pipeline_mode<synchronous>, transform_indices = @transform_1, window_bounds = array<i64: 8, 8>}]} {
    %c0_i32 = arith.constant 0 : i32
    %0 = arith.cmpi eq, %arg0, %c0_i32 : i32
    %1 = arith.extui %0 : i1 to i32
    %c0_i32_0 = arith.constant 0 : i32
    %2 = arith.cmpi ne, %1, %c0_i32_0 : i32
    scf.if %2 {
      %cst_8 = arith.constant 0.000000e+00 : f32
      %11 = vector.broadcast %cst_8 : f32 to vector<8x8xf32>
      %c0_9 = arith.constant 0 : index
      %c0_10 = arith.constant 0 : index
      %12 = vector.load %arg2[%c0_9, %c0_10] : memref<8x8xf32, #tpu.memory_space<vmem>>, vector<8x8xf32>
      tpu.vector_store %arg2[%c0_9, %c0_10], %11 {strides = array<i32>} : memref<8x8xf32, #tpu.memory_space<vmem>>, vector<8x8xf32>,
    } else {
    }
    %c0 = arith.constant 0 : index
    %c0_1 = arith.constant 0 : index
    %3 = vector.load %arg1[%c0, %c0_1] : memref<8x256xf32, #tpu.memory_space<vmem>>, vector<8x256xf32>
    %c0_2 = arith.constant 0 : index
    %c0_3 = arith.constant 0 : index
    %4 = vector.load %arg2[%c0_2, %c0_3] : memref<8x8xf32, #tpu.memory_space<vmem>>, vector<8x8xf32>
    %cst = arith.constant dense<0.000000e+00> : vector<8x8xf32>
    %5 = tpu.matmul %3, %3, %cst {dimension_numbers = #tpu.dot_dimension_numbers<[1], [1], [0], [0], [0, 0, 1, 0], [], []>} : vector<8x256xf32>, vector<8x256xf32>, vector<8x8xf32> -> vector<8x8xf32>
    %6 = arith.addf %4, %5 : vector<8x8xf32>
    %c0_4 = arith.constant 0 : index
    %c0_5 = arith.constant 0 : index
    %7 = vector.load %arg2[%c0_4, %c0_5] : memref<8x8xf32, #tpu.memory_space<vmem>>, vector<8x8xf32>
    tpu.vector_store %arg2[%c0_4, %c0_5], %6 {strides = array<i32>} : memref<8x8xf32, #tpu.memory_space<vmem>>, vector<8x8xf32>,
    %c0_i32_6 = arith.constant 0 : i32
    %8 = arith.cmpi eq, %arg0, %c0_i32_6 : i32
    %9 = arith.extui %8 : i1 to i32
    %c0_i32_7 = arith.constant 0 : i32
    %10 = arith.cmpi ne, %9, %c0_i32_7 : i32
    scf.if %10 {
      %c0_8 = arith.constant 0 : index
      %c0_9 = arith.constant 0 : index
      %11 = vector.load %arg2[%c0_8, %c0_9] : memref<8x8xf32, #tpu.memory_space<vmem>>, vector<8x8xf32>
      %cst_10 = arith.constant 4.8828125E-4 : f32
      %12 = vector.broadcast %cst_10 : f32 to vector<8x8xf32>
      %13 = arith.mulf %11, %12 : vector<8x8xf32>
      %c0_11 = arith.constant 0 : index
      %c0_12 = arith.constant 0 : index
      %14 = vector.load %arg2[%c0_11, %c0_12] : memref<8x8xf32, #tpu.memory_space<vmem>>, vector<8x8xf32>
      tpu.vector_store %arg2[%c0_11, %c0_12], %13 {strides = array<i32>} : memref<8x8xf32, #tpu.memory_space<vmem>>, vector<8x8xf32>,
    } else {
    }
    return
  }
  func.func @transform_0(%arg0: i32) -> (i32, i32) {
    %c0_i32 = arith.constant 0 : i32
    %c0_i32_0 = arith.constant 0 : i32
    return %c0_i32, %arg0 : i32, i32
  }
  func.func @transform_1(%arg0: i32) -> (i32, i32) {
    %c0_i32 = arith.constant 0 : i32
    %c0_i32_0 = arith.constant 0 : i32
    %c0_i32_1 = arith.constant 0 : i32
    return %c0_i32, %c0_i32_0 : i32, i32
  }
}

</mosaic_0001>

<bundles_post_ra>
// kernel: tpu_custom_call.1
= control target key start
LH: loop header
LB: loop body
LE: loop exit
PB: predicated region body
PF: predicated region fallthrough
CT: control target
= control target key end

     0   :  { %6 = vsyncpa [#allocation3], 0  ;;  %s193_s0 = inlined_call_operand.hbm [shape: f32[8,256], index: 0, kind: input, shape index: {}]   ;;  %s194_s1 = inlined_call_operand.hbm [shape: f32[8,8], index: 1, kind: output, shape index: {}]  }
   0x1   :  { %7 = vsyncpa [#allocation4], 0  ;;  %s171_s6 = smov [#allocation2]  }
   0x2   :  { %s14_s7 = sshll.u32 %s171_s6, 4  ;;  %s15_s7 = int_to_ptr.vmem [resolvable:$true] %s14_s7 }
   0x3   :  { %s135_s8 = scalar_lea.vmem %s15_s7, 256  ;;  %p140_p1 = scmp.lt.s32.totalorder %s15_s7, %s15_s7 }
   0x4   :  { %p136_p0 = scmp.ne.s32.totalorder %s15_s7, %s135_s8  ;;  %p141_p2 = scmp.lt.s32.totalorder %s135_s8, %s135_s8 }
   0x6   :  { %p142_p3 = por %p141_p2, %p140_p1 }
   0x8   :  { %p143_p4 = pnand %p142_p3, %p136_p0 }
   0xa   :  { %146 = shalt.err (!%p143_p4)
}
   0xb   :  { %17 = dma.hbm_to_vmem [thread:$0]  %s193_s0, 256, %s15_s7, [#allocation3]  }
   0xc   :  { %167 = dma.done.wait [#allocation3], 256  }
   0xd   :  { %168 = vsyncadd [#allocation3], 4294967040  ;;  %vm25_vm0 = vcmask 64512   ;;  %v172_v0 = vmov 0.0   ;;  %v28_v1 = vld [vmem:[#allocation2 + $0x8] sm:$0xff]  ;;  %v27_v2 = vld [vmem:[#allocation2] sm:$0xff] }
   0xe   :  { %26 = vst.msk [vmem:[#allocation5] sm:$0xff] %vm25_vm0, %v172_v0  ;;  %60 = vmatprep.subr.mxu0 %v28_v1  ;;  %94 = vmatprep.mubr.f32.mxu0 %v28_v1  ;;  %s173_s11 = smov [#allocation5]  }
   0xf   :  { %61 = vmatpush1.xpose.msra.mxu0 %v27_v2  ;;  %s115_s0 = sshll.u32 %s173_s11, 4  ;;  %s116_s0 = int_to_ptr.vmem [resolvable:$true] %s115_s0 }
  0x10   :  { %s147_s12 = scalar_lea.vmem %s116_s0, 128  ;;  %p152_p6 = scmp.lt.s32.totalorder %s116_s0, %s116_s0 }
  0x11   :  { %p148_p5 = scmp.ne.s32.totalorder %s116_s0, %s147_s12  ;;  %p153_p7 = scmp.lt.s32.totalorder %s147_s12, %s147_s12 }
  0x12   :  { %95 = vmatmul.mubr.f32.vlgmr.msra.gmra.mxu0 %v27_v2 }
  0x13   :  { %p154_p8 = por %p153_p7, %p152_p6 }
  0x15   :  { %v29_v3 = vld [vmem:[#allocation5] sm:$0xff]  ;;  %p155_p9 = pnand %p154_p8, %p148_p5 }
  0xd2   :  { %v96_v4 = vpop.f32.mrf.mxu0 }
  0xd3   :  { %v100_v5 = vadd.f32 %v96_v4, %v29_v3 }
  0xd4   :  { %v98_v6 = vpop.f32.mrf.mxu0 }
  0xd5   :  { %102 = vst.msk [vmem:[#allocation5] sm:$0xff] %vm25_vm0, %v100_v5 }
  0xdc   :  { %v106_v7 = vld [vmem:[#allocation5] sm:$0xff] }
  0xdd   :  { %v107_v8 = vmul.f32 0.00048828125, %v106_v7 }
  0xdf   :  { %108 = vst.msk [vmem:[#allocation5] sm:$0xff] %vm25_vm0, %v107_v8 }
  0xe0   :  { %158 = shalt.err (!%p155_p9)
}
  0xe1   :  { %118 = dma.vmem_to_hbm [thread:$0]  %s116_s0, 128, %s194_s1, [#allocation4]  }
  0xe2   :  { %169 = dma.done.wait [#allocation4], 128  }
  0xe3   :  { %170 = vsyncadd [#allocation4], 4294967168 }
  0xe4   :  { %122 = vsyncpa [#allocation3], 1 }
  0xe5   :  { %123 = vsyncpa [#allocation4], 1 }

</bundles_post_ra>
